<compile_context>
chip_gen: v5e
topology: v5e:2x2
jax: 0.10.0
libtpu: 0.0.40
codegen_flags: <defaults>
</compile_context>

<pallas_src>
import functools

import jax
import jax.numpy as jnp
from jax.experimental import pallas as pl
from jax.experimental.pallas import tpu as pltpu


def _erf(x):
    # Abramowitz & Stegun 7.1.26 rational approximation (|err| < 1.5e-7); the divide
    # is an approx reciprocal so it rides the EUP slot instead of the VALU.
    a1, a2, a3, a4, a5 = 0.254829592, -0.284496736, 1.421413741, -1.453152027, 1.061405429
    p = 0.3275911
    sign = jnp.where(x >= 0.0, 1.0, -1.0)
    ax = jnp.abs(x)
    t = pl.reciprocal(1.0 + p * ax, approx=True)
    poly = t * (a1 + t * (a2 + t * (a3 + t * (a4 + t * a5))))
    return sign * (1.0 - poly * jnp.exp(-ax * ax))


def _gelu_exact(x):
    # PyTorch nn.GELU() default is the exact (erf) form.
    return 0.5 * x * (1.0 + _erf(x * 0.7071067811865476))


def convnext_block_kernel(x_ref, halo_ref, wdw_ref, bdw_ref,
                          w1_ref, b1_ref, w2_ref, b2_ref, out_ref, *, c_true):
    # x_ref:    (1, C_p, TL)     NCL tile; channels on sublanes, sequence on lanes.
    # halo_ref: (1, 1, C_p, 2)   [:, 0] = column x[:, tile_start-1], [:, 1] = x[:, tile_end].
    # wdw_ref:  (3, C_p, C_p)    bf16 conv_dw taps, wdw[k][co, ci] = W[co, ci, k].
    # bdw_ref:  (C_p, 1) f32     conv_dw bias.
    # w1/b1:    (2C_p, C_p) bf16 / (2C_p, 1) f32   fc1 with LayerNorm affine folded in.
    # w2/b2:    (C_p, 2C_p) bf16 / (C_p, 1) f32    fc2 with LayerScale gamma folded in.
    # out_ref:  (1, C_p, TL)
    C_p = x_ref.shape[1]
    TL = x_ref.shape[2]
    bf16 = jnp.bfloat16

    x = x_ref[0]                                   # (C_p, TL), input dtype
    prev = halo_ref[0, 0, :, 0:1]                  # (C_p, 1)
    nxt = halo_ref[0, 0, :, 1:2]                   # (C_p, 1)

    # Conv1d(C, C, k=3, pad=1) as 3 channel-matmuls; neighbours produced by lane
    # rolls (XLU) with a one-lane select to splice in the halo columns.
    col = jax.lax.broadcasted_iota(jnp.int32, (C_p, TL), 1)
    x_prev = jnp.where(col == 0, prev, pltpu.roll(x, 1, axis=1)).astype(bf16)
    x_next = jnp.where(col == TL - 1, nxt, pltpu.roll(x, TL - 1, axis=1)).astype(bf16)
    x_b = x.astype(bf16)

    y = jnp.dot(wdw_ref[1], x_b, preferred_element_type=jnp.float32)
    y = y + jnp.dot(wdw_ref[0], x_prev, preferred_element_type=jnp.float32)
    y = y + jnp.dot(wdw_ref[2], x_next, preferred_element_type=jnp.float32)
    y = y + bdw_ref[...]                           # (C_p, TL) f32

    # LayerNorm over the (true) channel count, eps=1e-5; padded channel rows are
    # exactly zero so they do not perturb the stats.  Affine is folded into fc1.
    inv_c = 1.0 / c_true
    mean = jnp.sum(y, axis=0, keepdims=True) * inv_c
    var = jnp.sum(y * y, axis=0, keepdims=True) * inv_c - mean * mean
    var = jnp.maximum(var, 0.0)                    # one-pass cancellation guard
    y = (y - mean) * jax.lax.rsqrt(var + 1e-5)

    # ConvMlp: 1x1 convs == channel matmuls (bf16 MXU, f32 accumulation).
    h = jnp.dot(w1_ref[...], y.astype(bf16), preferred_element_type=jnp.float32)
    h = _gelu_exact(h + b1_ref[...])
    # TODO(synk): nn.Dropout(0.2) / DropPath are identity in eval mode; no RNG applied.
    o = jnp.dot(w2_ref[...], h.astype(bf16), preferred_element_type=jnp.float32)
    o = o + b2_ref[...]                            # LayerScale gamma already folded in

    # Residual add; re-read x_ref here so the f32 shortcut isn't live across the body.
    out_ref[0, :, :] = (o + x_ref[0].astype(jnp.float32)).astype(out_ref.dtype)


def _choose_tile_l(L, max_tile_l):
    """Return (TL, L_padded).  TL == L (single tile), or a multiple of 128 dividing
    L_padded so the lane axis of every tile stays (8,128)-aligned."""
    if L <= max_tile_l:
        return L, L
    t = (max_tile_l // 128) * 128
    while t >= 128:
        if L % t == 0:
            return t, L
        t -= 128
    # No 128-aligned divisor: pad L up to a multiple of a 128-aligned tile.
    t = max(128, (max_tile_l // 128) * 128)
    return t, ((L + t - 1) // t) * t


def _device_defaults(C):
    """Generation-aware (max_tile_l, vmem_limit_bytes)."""
    try:
        vmem_cap = pltpu.get_tpu_info().vmem_capacity_bytes
    except Exception:
        vmem_cap = 128 * 1024 * 1024
    if vmem_cap >= 100 * 1024 * 1024:            # v5e / v6e: 128 MiB VMEM per core
        max_tile_l, vmem_limit = 1024, 96 * 1024 * 1024
    else:                                        # v7x: 64 MiB VMEM per TensorCore
        max_tile_l, vmem_limit = 512, 36 * 1024 * 1024
    if C <= 256:                                 # amortize ~0.35 us per-grid-step overhead
        max_tile_l *= 2
    return max_tile_l, vmem_limit


def convnext_block_1d(x_ncl, params, *, max_tile_l=None, vmem_limit_bytes=None):
    """x_ncl: (B, C, L) — same NCL layout as the PyTorch module (f32 or bf16)."""
    B, C, L = x_ncl.shape
    if max_tile_l is None or vmem_limit_bytes is None:
        mt, vl = _device_defaults(C)
        max_tile_l = max_tile_l or mt
        vmem_limit_bytes = vmem_limit_bytes or vl

    # Channels live on sublanes in this kernel: pad to a multiple of 8 only if needed.
    C_p = ((C + 7) // 8) * 8
    Ch_p = 2 * C_p
    TL, L_p = _choose_tile_l(L, max_tile_l)
    nL = L_p // TL

    x_p = x_ncl
    if C_p != C or L_p != L:
        x_p = jnp.pad(x_ncl, ((0, 0), (0, C_p - C), (0, L_p - L)))

    # Merged halo columns: halo[b, l, :, 0] = x[b, :, l*TL-1] (zeros for l=0),
    # halo[b, l, :, 1] = x[b, :, (l+1)*TL] (zeros for the last tile).
    zcol = jnp.zeros((B, C_p, 1), x_p.dtype)
    if nL > 1:
        prev_cols = jnp.concatenate([zcol, x_p[:, :, TL - 1:L_p - 1:TL]], axis=2)
        next_cols = jnp.concatenate([x_p[:, :, TL:L_p:TL], zcol], axis=2)
    else:
        prev_cols, next_cols = zcol, zcol
    halo = jnp.stack([prev_cols, next_cols], axis=-1)          # (B, C_p, nL, 2)
    halo = jnp.transpose(halo, (0, 2, 1, 3))                   # (B, nL, C_p, 2) — tiny

    f32 = jnp.float32
    # conv_dw: (C_out, C_in, 3) -> taps stacked as (3, C_out_p, C_in_p).
    Wdw = jnp.pad(params["conv_dw_w"].astype(f32), ((0, C_p - C), (0, C_p - C), (0, 0)))
    wdw = jnp.transpose(Wdw, (2, 0, 1))
    bdw = jnp.pad(params["conv_dw_b"].astype(f32), (0, C_p - C)).reshape(C_p, 1)

    # Fold LayerNorm affine into fc1 and LayerScale gamma into fc2 (all in f32).
    Ch = 2 * C
    lnw = jnp.pad(params["ln_w"].astype(f32), (0, C_p - C))
    lnb = jnp.pad(params["ln_b"].astype(f32), (0, C_p - C))
    gam = jnp.pad(params["gamma"].astype(f32), (0, C_p - C))
    W1 = jnp.pad(params["fc1_w"][:, :, 0].astype(f32), ((0, Ch_p - Ch), (0, C_p - C)))
    b1 = jnp.pad(params["fc1_b"].astype(f32), (0, Ch_p - Ch))
    W2 = jnp.pad(params["fc2_w"][:, :, 0].astype(f32), ((0, C_p - C), (0, Ch_p - Ch)))
    b2 = jnp.pad(params["fc2_b"].astype(f32), (0, C_p - C))
    w1f = W1 * lnw[None, :]
    b1f = (W1 @ lnb + b1).reshape(Ch_p, 1)
    w2f = gam[:, None] * W2
    b2f = (gam * b2).reshape(C_p, 1)

    # bf16 weights for the MXU; biases stay f32.
    wdw_bf = wdw.astype(jnp.bfloat16)
    w1_bf = w1f.astype(jnp.bfloat16)
    w2_bf = w2f.astype(jnp.bfloat16)

    out_p = pl.pallas_call(
        functools.partial(convnext_block_kernel, c_true=C),
        out_shape=jax.ShapeDtypeStruct((B, C_p, L_p), x_ncl.dtype),
        grid=(B, nL),
        in_specs=[
            pl.BlockSpec((1, C_p, TL), lambda b, l: (b, 0, l)),       # x tile (NCL)
            pl.BlockSpec((1, 1, C_p, 2), lambda b, l: (b, l, 0, 0)),  # merged halo cols
            pl.BlockSpec((3, C_p, C_p), lambda b, l: (0, 0, 0)),      # conv_dw taps
            pl.BlockSpec((C_p, 1), lambda b, l: (0, 0)),              # conv_dw bias
            pl.BlockSpec((Ch_p, C_p), lambda b, l: (0, 0)),           # fc1 (LN folded)
            pl.BlockSpec((Ch_p, 1), lambda b, l: (0, 0)),             # fc1 bias
            pl.BlockSpec((C_p, Ch_p), lambda b, l: (0, 0)),           # fc2 (gamma folded)
            pl.BlockSpec((C_p, 1), lambda b, l: (0, 0)),              # fc2 bias
        ],
        out_specs=pl.BlockSpec((1, C_p, TL), lambda b, l: (b, 0, l)),
        compiler_params=pltpu.CompilerParams(
            dimension_semantics=("parallel", "parallel"),
            vmem_limit_bytes=vmem_limit_bytes),
    )(x_p, halo, wdw_bf, bdw, w1_bf, b1f, w2_bf, b2f)

    if C_p != C or L_p != L:
        out_p = out_p[:, :C, :L]
    return out_p


def make_params(key, C):
    Ch = 2 * C
    k = jax.random.split(key, 4)
    return {
        # nn.Conv1d(C, C, kernel_size=3): weight (Cout, Cin, 3), bias (Cout,)
        "conv_dw_w": 0.02 * jax.random.normal(k[0], (C, C, 3), jnp.float32),
        "conv_dw_b": 0.01 * jax.random.normal(k[3], (C,), jnp.float32),
        # nn.LayerNorm(C)
        "ln_w": jnp.ones((C,), jnp.float32),
        "ln_b": jnp.zeros((C,), jnp.float32),
        # ConvMlp: fc1 = Conv1d(C, 2C, 1), fc2 = Conv1d(2C, C, 1)
        "fc1_w": 0.02 * jax.random.normal(k[1], (Ch, C, 1), jnp.float32),
        "fc1_b": jnp.zeros((Ch,), jnp.float32),
        "fc2_w": 0.02 * jax.random.normal(k[2], (C, Ch, 1), jnp.float32),
        "fc2_b": jnp.zeros((C,), jnp.float32),
        # LayerScale1d(C, 1e-6)
        "gamma": 1e-6 * jnp.ones((C,), jnp.float32),
    }


if __name__ == "__main__":
    # (batch, in_chs, seq_len) in NCL like the PyTorch module.  L=256 with
    # max_tile_l=128 exercises the L-tiling + halo path with 128-aligned tiles;
    # C=4 exercises the channel-padding (C_p=8) path.
    B, C, L = 2, 4, 256
    key = jax.random.PRNGKey(0)
    kx, kp = jax.random.split(key)
    x = jax.random.normal(kx, (B, C, L), jnp.float32)
    params = make_params(kp, C)

    out = convnext_block_1d(x, params, max_tile_l=128)
    jax.block_until_ready(out)
    assert out.shape == (B, C, L), out.shape
    assert bool(jnp.all(jnp.isfinite(out)))
    print("KERNEL_OK")
</pallas_src>

<mosaic_0001>
module attributes {stable_mosaic.version = 11 : i64} {
  func.func @convnext_block_kernel(%arg0: i32, %arg1: i32, %arg2: memref<1x8x128xf32, #tpu.memory_space<vmem>>, %arg3: memref<1x1x8x2xf32, #tpu.memory_space<vmem>>, %arg4: memref<3x8x8xbf16, #tpu.memory_space<vmem>>, %arg5: memref<8x1xf32, #tpu.memory_space<vmem>>, %arg6: memref<16x8xbf16, #tpu.memory_space<vmem>>, %arg7: memref<16x1xf32, #tpu.memory_space<vmem>>, %arg8: memref<8x16xbf16, #tpu.memory_space<vmem>>, %arg9: memref<8x1xf32, #tpu.memory_space<vmem>>, %arg10: memref<1x8x128xf32, #tpu.memory_space<vmem>>) attributes {dimension_semantics = [#tpu.dimension_semantics<parallel>, #tpu.dimension_semantics<parallel>], iteration_bounds = array<i64: 2, 2>, scalar_prefetch = 0 : i64, scratch_operands = 0 : i64, tpu.core_type = #tpu.core_type<tc>, window_params = [{transform_indices = @transform_0, window_bounds = array<i64: 1, 8, 128>}, {transform_indices = @transform_1, window_bounds = array<i64: 1, 1, 8, 2>}, {pipeline_mode = #tpu.pipeline_mode<synchronous>, transform_indices = @transform_2, window_bounds = array<i64: 3, 8, 8>}, {pipeline_mode = #tpu.pipeline_mode<synchronous>, transform_indices = @transform_3, window_bounds = array<i64: 8, 1>}, {pipeline_mode = #tpu.pipeline_mode<synchronous>, transform_indices = @transform_4, window_bounds = array<i64: 16, 8>}, {pipeline_mode = #tpu.pipeline_mode<synchronous>, transform_indices = @transform_5, window_bounds = array<i64: 16, 1>}, {pipeline_mode = #tpu.pipeline_mode<synchronous>, transform_indices = @transform_6, window_bounds = array<i64: 8, 16>}, {pipeline_mode = #tpu.pipeline_mode<synchronous>, transform_indices = @transform_7, window_bounds = array<i64: 8, 1>}, {transform_indices = @transform_8, window_bounds = array<i64: 1, 8, 128>}]} {
    %c0 = arith.constant 0 : index
    %c0_0 = arith.constant 0 : index
    %c0_1 = arith.constant 0 : index
    %0 = vector.load %arg2[%c0, %c0_0, %c0_1] : memref<1x8x128xf32, #tpu.memory_space<vmem>>, vector<1x8x128xf32>
    %1 = vector.shape_cast %0 : vector<1x8x128xf32> to vector<8x128xf32>
    %c0_2 = arith.constant 0 : index
    %c0_3 = arith.constant 0 : index
    %c0_4 = arith.constant 0 : index
    %c0_5 = arith.constant 0 : index
    %2 = vector.load %arg3[%c0_2, %c0_3, %c0_4, %c0_5] : memref<1x1x8x2xf32, #tpu.memory_space<vmem>>, vector<1x1x8x1xf32>
    %3 = vector.shape_cast %2 : vector<1x1x8x1xf32> to vector<8x1xf32>
    %c0_6 = arith.constant 0 : index
    %c0_7 = arith.constant 0 : index
    %c0_8 = arith.constant 0 : index
    %c1 = arith.constant 1 : index
    %4 = vector.load %arg3[%c0_6, %c0_7, %c0_8, %c1] : memref<1x1x8x2xf32, #tpu.memory_space<vmem>>, vector<1x1x8x1xf32>
    %5 = vector.shape_cast %4 : vector<1x1x8x1xf32> to vector<8x1xf32>
    %6 = tpu.iota {dimensions = array<i32: 1>} : vector<8x128xi32>
    %c0_i32 = arith.constant 0 : i32
    %7 = vector.broadcast %c0_i32 : i32 to vector<8x128xi32>
    %8 = arith.cmpi eq, %6, %7 : vector<8x128xi32>
    %c1_i32 = arith.constant 1 : i32
    %9 = tpu.dynamic_rotate %1 by %c1_i32 dim 1 : vector<8x128xf32>, i32 -> vector<8x128xf32>
    %10 = vector.shape_cast %3 : vector<8x1xf32> to vector<8x1xf32>
    %11 = vector.broadcast %10 : vector<8x1xf32> to vector<8x128xf32>
    %12 = arith.select %8, %11, %9 : vector<8x128xi1>, vector<8x128xf32>
    %13 = arith.truncf %12 : vector<8x128xf32> to vector<8x128xbf16>
    %c127_i32 = arith.constant 127 : i32
    %14 = vector.broadcast %c127_i32 : i32 to vector<8x128xi32>
    %15 = arith.cmpi eq, %6, %14 : vector<8x128xi32>
    %c127_i32_9 = arith.constant 127 : i32
    %16 = tpu.dynamic_rotate %1 by %c127_i32_9 dim 1 : vector<8x128xf32>, i32 -> vector<8x128xf32>
    %17 = vector.shape_cast %5 : vector<8x1xf32> to vector<8x1xf32>
    %18 = vector.broadcast %17 : vector<8x1xf32> to vector<8x128xf32>
    %19 = arith.select %15, %18, %16 : vector<8x128xi1>, vector<8x128xf32>
    %20 = arith.truncf %19 : vector<8x128xf32> to vector<8x128xbf16>
    %21 = arith.truncf %1 : vector<8x128xf32> to vector<8x128xbf16>
    %c1_10 = arith.constant 1 : index
    %c0_11 = arith.constant 0 : index
    %c0_12 = arith.constant 0 : index
    %22 = vector.load %arg4[%c1_10, %c0_11, %c0_12] : memref<3x8x8xbf16, #tpu.memory_space<vmem>>, vector<1x8x8xbf16>
    %23 = vector.shape_cast %22 : vector<1x8x8xbf16> to vector<8x8xbf16>
    %cst = arith.constant dense<0.000000e+00> : vector<8x128xf32>
    %24 = tpu.matmul %23, %21, %cst {dimension_numbers = #tpu.dot_dimension_numbers<[1], [0], [0], [1], [0, 0, 1, 1], [], []>} : vector<8x8xbf16>, vector<8x128xbf16>, vector<8x128xf32> -> vector<8x128xf32>
    %c0_13 = arith.constant 0 : index
    %c0_14 = arith.constant 0 : index
    %c0_15 = arith.constant 0 : index
    %25 = vector.load %arg4[%c0_13, %c0_14, %c0_15] : memref<3x8x8xbf16, #tpu.memory_space<vmem>>, vector<1x8x8xbf16>
    %26 = vector.shape_cast %25 : vector<1x8x8xbf16> to vector<8x8xbf16>
    %cst_16 = arith.constant dense<0.000000e+00> : vector<8x128xf32>
    %27 = tpu.matmul %26, %13, %cst_16 {dimension_numbers = #tpu.dot_dimension_numbers<[1], [0], [0], [1], [0, 0, 1, 1], [], []>} : vector<8x8xbf16>, vector<8x128xbf16>, vector<8x128xf32> -> vector<8x128xf32>
    %28 = arith.addf %24, %27 : vector<8x128xf32>
    %c2 = arith.constant 2 : index
    %c0_17 = arith.constant 0 : index
    %c0_18 = arith.constant 0 : index
    %29 = vector.load %arg4[%c2, %c0_17, %c0_18] : memref<3x8x8xbf16, #tpu.memory_space<vmem>>, vector<1x8x8xbf16>
    %30 = vector.shape_cast %29 : vector<1x8x8xbf16> to vector<8x8xbf16>
    %cst_19 = arith.constant dense<0.000000e+00> : vector<8x128xf32>
    %31 = tpu.matmul %30, %20, %cst_19 {dimension_numbers = #tpu.dot_dimension_numbers<[1], [0], [0], [1], [0, 0, 1, 1], [], []>} : vector<8x8xbf16>, vector<8x128xbf16>, vector<8x128xf32> -> vector<8x128xf32>
    %32 = arith.addf %28, %31 : vector<8x128xf32>
    %c0_20 = arith.constant 0 : index
    %c0_21 = arith.constant 0 : index
    %33 = vector.load %arg5[%c0_20, %c0_21] : memref<8x1xf32, #tpu.memory_space<vmem>>, vector<8x1xf32>
    %34 = vector.broadcast %33 : vector<8x1xf32> to vector<8x128xf32>
    %35 = arith.addf %32, %34 : vector<8x128xf32>
    %cst_22 = arith.constant dense<0.000000e+00> : vector<128xf32>
    %36 = vector.multi_reduction <add>, %35, %cst_22 [0] : vector<8x128xf32> to vector<128xf32>
    %37 = vector.shape_cast %36 : vector<128xf32> to vector<1x128xf32>
    %cst_23 = arith.constant 2.500000e-01 : f32
    %38 = vector.broadcast %cst_23 : f32 to vector<1x128xf32>
    %39 = arith.mulf %37, %38 : vector<1x128xf32>
    %40 = arith.mulf %35, %35 : vector<8x128xf32>
    %cst_24 = arith.constant dense<0.000000e+00> : vector<128xf32>
    %41 = vector.multi_reduction <add>, %40, %cst_24 [0] : vector<8x128xf32> to vector<128xf32>
    %42 = vector.shape_cast %41 : vector<128xf32> to vector<1x128xf32>
    %cst_25 = arith.constant 2.500000e-01 : f32
    %43 = vector.broadcast %cst_25 : f32 to vector<1x128xf32>
    %44 = arith.mulf %42, %43 : vector<1x128xf32>
    %45 = arith.mulf %39, %39 : vector<1x128xf32>
    %46 = arith.subf %44, %45 : vector<1x128xf32>
    %cst_26 = arith.constant 0.000000e+00 : f32
    %47 = vector.broadcast %cst_26 : f32 to vector<1x128xf32>
    %48 = arith.maximumf %46, %47 : vector<1x128xf32>
    %49 = vector.broadcast %39 : vector<1x128xf32> to vector<8x128xf32>
    %50 = arith.subf %35, %49 : vector<8x128xf32>
    %cst_27 = arith.constant 9.99999974E-6 : f32
    %51 = vector.broadcast %cst_27 : f32 to vector<1x128xf32>
    %52 = arith.addf %48, %51 : vector<1x128xf32>
    %53 = math.rsqrt %52 : vector<1x128xf32>
    %54 = vector.broadcast %53 : vector<1x128xf32> to vector<8x128xf32>
    %55 = arith.mulf %50, %54 : vector<8x128xf32>
    %c0_28 = arith.constant 0 : index
    %c0_29 = arith.constant 0 : index
    %56 = vector.load %arg6[%c0_28, %c0_29] : memref<16x8xbf16, #tpu.memory_space<vmem>>, vector<16x8xbf16>
    %57 = arith.truncf %55 : vector<8x128xf32> to vector<8x128xbf16>
    %cst_30 = arith.constant dense<0.000000e+00> : vector<16x128xf32>
    %58 = tpu.matmul %56, %57, %cst_30 {dimension_numbers = #tpu.dot_dimension_numbers<[1], [0], [0], [1], [0, 0, 1, 1], [], []>} : vector<16x8xbf16>, vector<8x128xbf16>, vector<16x128xf32> -> vector<16x128xf32>
    %c0_31 = arith.constant 0 : index
    %c0_32 = arith.constant 0 : index
    %59 = vector.load %arg7[%c0_31, %c0_32] : memref<16x1xf32, #tpu.memory_space<vmem>>, vector<16x1xf32>
    %60 = vector.broadcast %59 : vector<16x1xf32> to vector<16x128xf32>
    %61 = arith.addf %58, %60 : vector<16x128xf32>
    %cst_33 = arith.constant 5.000000e-01 : f32
    %62 = vector.broadcast %cst_33 : f32 to vector<16x128xf32>
    %63 = arith.mulf %62, %61 : vector<16x128xf32>
    %cst_34 = arith.constant 0.707106769 : f32
    %64 = vector.broadcast %cst_34 : f32 to vector<16x128xf32>
    %65 = arith.mulf %61, %64 : vector<16x128xf32>
    %cst_35 = arith.constant 0.000000e+00 : f32
    %66 = vector.broadcast %cst_35 : f32 to vector<16x128xf32>
    %67 = arith.cmpf oge, %65, %66 : vector<16x128xf32>
    %cst_36 = arith.constant 1.000000e+00 : f32
    %cst_37 = arith.constant -1.000000e+00 : f32
    %68 = vector.broadcast %cst_36 : f32 to vector<16x128xf32>
    %69 = vector.broadcast %cst_37 : f32 to vector<16x128xf32>
    %70 = arith.select %67, %68, %69 : vector<16x128xi1>, vector<16x128xf32>
    %71 = math.absf %65 : vector<16x128xf32>
    %cst_38 = arith.constant 0.327591091 : f32
    %72 = vector.broadcast %cst_38 : f32 to vector<16x128xf32>
    %73 = arith.mulf %72, %71 : vector<16x128xf32>
    %cst_39 = arith.constant 1.000000e+00 : f32
    %74 = vector.broadcast %cst_39 : f32 to vector<16x128xf32>
    %75 = arith.addf %74, %73 : vector<16x128xf32>
    %76 = tpu.reciprocal %75 {approx = true} : vector<16x128xf32> -> vector<16x128xf32>
    %cst_40 = arith.constant 1.06140542 : f32
    %77 = vector.broadcast %cst_40 : f32 to vector<16x128xf32>
    %78 = arith.mulf %76, %77 : vector<16x128xf32>
    %cst_41 = arith.constant -1.45315206 : f32
    %79 = vector.broadcast %cst_41 : f32 to vector<16x128xf32>
    %80 = arith.addf %79, %78 : vector<16x128xf32>
    %81 = arith.mulf %76, %80 : vector<16x128xf32>
    %cst_42 = arith.constant 1.42141378 : f32
    %82 = vector.broadcast %cst_42 : f32 to vector<16x128xf32>
    %83 = arith.addf %82, %81 : vector<16x128xf32>
    %84 = arith.mulf %76, %83 : vector<16x128xf32>
    %cst_43 = arith.constant -0.284496725 : f32
    %85 = vector.broadcast %cst_43 : f32 to vector<16x128xf32>
    %86 = arith.addf %85, %84 : vector<16x128xf32>
    %87 = arith.mulf %76, %86 : vector<16x128xf32>
    %cst_44 = arith.constant 0.254829586 : f32
    %88 = vector.broadcast %cst_44 : f32 to vector<16x128xf32>
    %89 = arith.addf %88, %87 : vector<16x128xf32>
    %90 = arith.mulf %76, %89 : vector<16x128xf32>
    %cst_45 = arith.constant 0.000000e+00 : f32
    %91 = vector.broadcast %cst_45 : f32 to vector<16x128xf32>
    %92 = arith.subf %91, %71 : vector<16x128xf32>
    %93 = arith.mulf %92, %71 : vector<16x128xf32>
    %94 = math.exp %93 : vector<16x128xf32>
    %95 = arith.mulf %90, %94 : vector<16x128xf32>
    %cst_46 = arith.constant 1.000000e+00 : f32
    %96 = vector.broadcast %cst_46 : f32 to vector<16x128xf32>
    %97 = arith.subf %96, %95 : vector<16x128xf32>
    %98 = arith.mulf %70, %97 : vector<16x128xf32>
    %cst_47 = arith.constant 1.000000e+00 : f32
    %99 = vector.broadcast %cst_47 : f32 to vector<16x128xf32>
    %100 = arith.addf %99, %98 : vector<16x128xf32>
    %101 = arith.mulf %63, %100 : vector<16x128xf32>
    %c0_48 = arith.constant 0 : index
    %c0_49 = arith.constant 0 : index
    %102 = vector.load %arg8[%c0_48, %c0_49] : memref<8x16xbf16, #tpu.memory_space<vmem>>, vector<8x16xbf16>
    %103 = arith.truncf %101 : vector<16x128xf32> to vector<16x128xbf16>
    %cst_50 = arith.constant dense<0.000000e+00> : vector<8x128xf32>
    %104 = tpu.matmul %102, %103, %cst_50 {dimension_numbers = #tpu.dot_dimension_numbers<[1], [0], [0], [1], [0, 0, 1, 1], [], []>} : vector<8x16xbf16>, vector<16x128xbf16>, vector<8x128xf32> -> vector<8x128xf32>
    %c0_51 = arith.constant 0 : index
    %c0_52 = arith.constant 0 : index
    %105 = vector.load %arg9[%c0_51, %c0_52] : memref<8x1xf32, #tpu.memory_space<vmem>>, vector<8x1xf32>
    %106 = vector.broadcast %105 : vector<8x1xf32> to vector<8x128xf32>
    %107 = arith.addf %104, %106 : vector<8x128xf32>
    %c0_53 = arith.constant 0 : index
    %c0_54 = arith.constant 0 : index
    %c0_55 = arith.constant 0 : index
    %108 = vector.load %arg2[%c0_53, %c0_54, %c0_55] : memref<1x8x128xf32, #tpu.memory_space<vmem>>, vector<1x8x128xf32>
    %109 = vector.shape_cast %108 : vector<1x8x128xf32> to vector<8x128xf32>
    %110 = arith.addf %107, %109 : vector<8x128xf32>
    %c0_56 = arith.constant 0 : index
    %c0_57 = arith.constant 0 : index
    %c0_58 = arith.constant 0 : index
    %111 = vector.load %arg10[%c0_56, %c0_57, %c0_58] : memref<1x8x128xf32, #tpu.memory_space<vmem>>, vector<1x8x128xf32>
    %112 = vector.shape_cast %111 : vector<1x8x128xf32> to vector<8x128xf32>
    %113 = vector.shape_cast %110 : vector<8x128xf32> to vector<1x8x128xf32>
    tpu.vector_store %arg10[%c0_56, %c0_57, %c0_58], %113 {strides = array<i32>} : memref<1x8x128xf32, #tpu.memory_space<vmem>>, vector<1x8x128xf32>,
    return
  }
  func.func @transform_0(%arg0: i32, %arg1: i32) -> (i32, i32, i32) {
    %c0_i32 = arith.constant 0 : i32
    %c0_i32_0 = arith.constant 0 : i32
    return %arg0, %c0_i32, %arg1 : i32, i32, i32
  }
  func.func @transform_1(%arg0: i32, %arg1: i32) -> (i32, i32, i32, i32) {
    %c0_i32 = arith.constant 0 : i32
    %c0_i32_0 = arith.constant 0 : i32
    %c0_i32_1 = arith.constant 0 : i32
    return %arg0, %arg1, %c0_i32, %c0_i32_0 : i32, i32, i32, i32
  }
  func.func @transform_2(%arg0: i32, %arg1: i32) -> (i32, i32, i32) {
    %c0_i32 = arith.constant 0 : i32
    %c0_i32_0 = arith.constant 0 : i32
    %c0_i32_1 = arith.constant 0 : i32
    %c0_i32_2 = arith.constant 0 : i32
    return %c0_i32, %c0_i32_0, %c0_i32_1 : i32, i32, i32
  }
  func.func @transform_3(%arg0: i32, %arg1: i32) -> (i32, i32) {
    %c0_i32 = arith.constant 0 : i32
    %c0_i32_0 = arith.constant 0 : i32
    %c0_i32_1 = arith.constant 0 : i32
    return %c0_i32, %c0_i32_0 : i32, i32
  }
  func.func @transform_4(%arg0: i32, %arg1: i32) -> (i32, i32) {
    %c0_i32 = arith.constant 0 : i32
    %c0_i32_0 = arith.constant 0 : i32
    %c0_i32_1 = arith.constant 0 : i32
    return %c0_i32, %c0_i32_0 : i32, i32
  }
  func.func @transform_5(%arg0: i32, %arg1: i32) -> (i32, i32) {
    %c0_i32 = arith.constant 0 : i32
    %c0_i32_0 = arith.constant 0 : i32
    %c0_i32_1 = arith.constant 0 : i32
    return %c0_i32, %c0_i32_0 : i32, i32
  }
  func.func @transform_6(%arg0: i32, %arg1: i32) -> (i32, i32) {
    %c0_i32 = arith.constant 0 : i32
    %c0_i32_0 = arith.constant 0 : i32
    %c0_i32_1 = arith.constant 0 : i32
    return %c0_i32, %c0_i32_0 : i32, i32
  }
  func.func @transform_7(%arg0: i32, %arg1: i32) -> (i32, i32) {
    %c0_i32 = arith.constant 0 : i32
    %c0_i32_0 = arith.constant 0 : i32
    %c0_i32_1 = arith.constant 0 : i32
    return %c0_i32, %c0_i32_0 : i32, i32
  }
  func.func @transform_8(%arg0: i32, %arg1: i32) -> (i32, i32, i32) {
    %c0_i32 = arith.constant 0 : i32
    %c0_i32_0 = arith.constant 0 : i32
    return %arg0, %c0_i32, %arg1 : i32, i32, i32
  }
}

</mosaic_0001>

<bundles_post_ra>
// kernel: tpu_custom_call.1
= control target key start
LH: loop header
LB: loop body
LE: loop exit
PB: predicated region body
PF: predicated region fallthrough
CT: control target
= control target key end

     0   :  { %13 = vsyncpa [#allocation3], 0  ;;  %s1151_s0 = inlined_call_operand.vmem [shape: f32[2,8,256], index: 0, kind: input, shape index: {}]   ;;  %s1152_s1 = inlined_call_operand.vmem [shape: f32[2,2,8,2], index: 1, kind: input, shape index: {}]   ;;  %s1153_s2 = inlined_call_operand.vmem [shape: bf16[3,8,8], index: 2, kind: input, shape index: {}]   ;;  %s1154_s3 = inlined_call_operand.vmem [shape: f32[8,1], index: 3, kind: input, shape index: {}]   ;;  %s1155_s4 = inlined_call_operand.vmem [shape: bf16[16,8], index: 4, kind: input, shape index: {}]   ;;  %s1156_s5 = inlined_call_operand.vmem [shape: f32[16,1], index: 5, kind: input, shape index: {}]   ;;  %s1157_s6 = inlined_call_operand.vmem [shape: bf16[8,16], index: 6, kind: input, shape index: {}]   ;;  %s1158_s7 = inlined_call_operand.vmem [shape: f32[8,1], index: 7, kind: input, shape index: {}]   ;;  %s1159_s8 = inlined_call_operand.hbm [shape: f32[2,8,256], index: 8, kind: output, shape index: {}]  }
   0x1   :  { %15 = vsyncpa [#allocation3 + $0x1], 0  ;;  %s984_s27 = smov 0   ;;  %s986_s28 = smov 0  }
   0x2   :  { %s988_s29 = smov 0   ;;  %s990_s30 = smov 0  }
   0x3   :  { %s992_s9 = smov 0   ;;  %s994_s10 = smov 0  }
   0x4   :  { %s996_s11 = smov 0   ;;  %s998_s12 = smov 0  }
   0x5 LB: > { %1164 = sst [smem:[#allocation5_spill]] %s924_s10  ;;  %s721_s13 = sadd.s32 4294967295, %s932_s12   ;;  %s932_s12 = sphi %s998_s12, %s21_s12   ;;  %s928_s11 = sphi %s996_s11, %s1173_s11   ;;  %s924_s10 = sphi %s994_s10, %s1172_s10   ;;  %s920_s9 = sphi %s992_s9, %s1171_s9   ;;  %s916_s30 = sphi %s990_s30, %s1170_s30   ;;  %s912_s29 = sphi %s988_s29, %s1176_s29   ;;  %s908_s28 = sphi %s986_s28, %s1175_s28   ;;  %s904_s27 = sphi %s984_s27, %s1174_s27  }
   0x6   : > { %1165 = sst [smem:[#allocation6_spill]] %s928_s11  ;;  %s722_s14 = sadd.s32 4294967294, %s932_s12  }
   0x7   : > { %s30_s15 = sadd.s32 1, %s924_s10  ;;  %s33_s16 = sadd.s32 1, %s928_s11 }
   0x8   : > { %p31_p0 = scmp.ge.s32.totalorder %s30_s15, 2  ;;  %p234_p1 = scmp.ne.s32.totalorder %s912_s29, %s908_s28 }
   0x9   : > { %p235_p2 = scmp.eq.s32.totalorder %s721_s13, 3  ;;  %p240_p5 = scmp.ne.s32.totalorder %s908_s28, %s904_s27 }
   0xa   : > { %s1178_s15 = smov (%p31_p0, %s30_s15), 0  ;;  %s1180_s16 = smov (!%p31_p0, %s33_s16), %s928_s11 }
   0xb   : > { %1166 = sst [smem:[#allocation7_spill]] %s1178_s15  ;;  %s220_s17 = ssub.s32 %s924_s10, %s1178_s15 }
   0xc   : > { %p1035_p3 = por %p235_p2, %p234_p1  ;;  %p35_p4 = scmp.ge.s32.totalorder %s1180_s16, 2 }
   0xd   : > { %p241_p6 = scmp.eq.s32.totalorder %s722_s14, 3  ;;  %p725_p7 = scmp.ge.s32.totalorder %s932_s12, 1 }
   0xe   : > { %s1182_s16 = smov (%p35_p4, %s1180_s16), 0  ;;  %p299_p9 = scmp.lt.s32.totalorder %s932_s12, 5 }
   0xf   : > { %1168 = sst [smem:[#allocation8_spill]] %s1182_s16  ;;  %p1044_p8 = por %p241_p6, %p240_p5 }
  0x10   : > { %s219_s20 = ssub.s32 %s928_s11, %s1182_s16  ;;  %s224_s21 = sadd.s32 1, %s912_s29 }
  0x11   : > { %s221_s22 = sor.u32 %s220_s17, %s219_s20  ;;  %p300_p10 = pnand %p725_p7, %p299_p9 }
  0x12   : > { %p222_p11 = scmp.eq.s32.totalorder %s221_s22, 0  ;;  %p344_p12 = scmp.lt.s32.totalorder (!%p300_p10), %s920_s9, 1 }
  0x13   : > { %303 = sbr.rel (%p300_p10) target bundleno = 669 (0x29d), region = 52  ;;  %p346_p13 = scmp.lt.s32.totalorder (!%p300_p10), %s916_s30, 1 }
  0x14   : > { %s1053_s23 = scalar_select %p222_p11, %s912_s29, %s224_s21  }
  0x15   : > { %s936_s22 = smov (!%p300_p10), 1   ;;  %s937_s16 = smov (!%p300_p10), 127  }
  0x16   : > { %s743_s11 = sshll.u32 (!%p300_p10), %s920_s9, 1  ;;  %s341_s15 = sand.u32 (!%p300_p10), 1, %s908_s28  }
  0x18   : > { %v934_v0 = vmov 1   ;;  %v935_v1 = vmov 0   ;;  %s345_s24 = scalar_select %p344_p12, %s920_s9, 1  ;;  %v492_v4 = vld [vmem:[%s1156_s5 + $0x8] sm:$0xff]  ;;  %vm392_vm0 = vcmask 1043456   ;;  %vm388_vm1 = vcmask 64512  }
  0x19   : > { %824 = vset.pattern.permute.xlu0 %v934_v0  ;;  %825 = vset.pattern.permute.xlu1 %v935_v1  ;;  %s347_s25 = scalar_select %p346_p13, %s916_s30, 1  ;;  %v731_v7 = vld [vmem:[%s1153_s2 + $0x4] sm:$0xf]  ;;  %v363_v10 = vlaneseq  ;;  %v387_v23 = vld [vmem:[%s1153_s2] sm:$0xf]  ;;  %vm588_vm9 = vcmask 130048  }
  0x1a   : > { %826 = vset.pattern.permute.xlu2 %v935_v1  ;;  %s727_s26 = sshll.u32 %s345_s24, 1  ;;  %v450_v8 = vld [vmem:[%s1154_s3] sm:$0xff]  ;;  %v734_v24 = vld [vmem:[%s1153_s2 + $0x8] sm:$0xf]  ;;  %s608_s9 = scalar_lea.sflag [#allocation3], %s341_s15 }
  0x1b   : > { %s349_s13 = sadd.s32 %s727_s26, %s347_s25  ;;  %453 = vperm.xlu2 %826, %v450_v8   ;;  %v491_v9 = vld [vmem:[%s1156_s5] sm:$0xff]  ;;  %v364_v14 = vand.u32 127, %v363_v10 }
  0x1c   : > { %s728_s14 = sshll.u32 %s349_s13, 3  ;;  %v582_v11 = vld [vmem:[%s1158_s7] sm:$0xff]  ;;  %s618_s13 = sadd.s32 %s916_s30, %s743_s11 }
  0x1d   : > { %s351_s21 = scalar_lea.vmem %s1151_s0, %s728_s14  ;;  %s359_s10 = scalar_lea.vmem %s1152_s1, %s728_s14  ;;  %vm365_vm2 = vcmp.eq.s32.totalorder %v364_v14, 0  ;;  %vm375_vm3 = vcmp.eq.s32.totalorder %v364_v14, 127 }
  0x1e   : > { %v1062_v2 = vld [vmem:[%s351_s21] sm:$0xff]  ;;  %s726_s14 = sshll.u32 %s341_s15, 3  ;;  %s744_s17 = sshll.u32 %s618_s13, 3 }
  0x1f   : > { %366 = vrot.lane.b32.xlu1 %v1062_v2, %s936_s22  ;;  %376 = vrot.lane.b32.xlu0 %v1062_v2, %s937_s16  ;;  %v362_v3 = vld [vmem:[%s359_s10] sm:$0xff]  ;;  %v384_v5 = vpack.c.bf16 %v1062_v2, %v1062_v2  ;;  %s620_s22 = scalar_lea.hbm %s1159_s8, %s744_s17  ;;  %s343_s24 = scalar_lea.vmem [#allocation2], %s726_s14 }
  0x20   : > { %s622_s25 = sshll.u32 %s343_s24, 4  ;;  %s624_s16 = sshll.u32 %s620_s22, 4  ;;  %s623_s25 = int_to_ptr.vmem [resolvable:$true] %s622_s25  ;;  %s625_s16 = int_to_ptr.hbm [resolvable:$true] %s624_s16 }
  0x21   : > { %v413_v6 = vsel %vm392_vm0, %v384_v5, 0  ;;  %s852_s30 = sshra.s32 %s625_s16, 4  ;;  %s858_s13 = scalar_lea.hbm %s1159_s8, 32  ;;  %s853_s30 = int_to_ptr.hbm [resolvable:$true] %s852_s30 }
  0x22   : > { %422 = vmatpush.bf16.msra.mxu1 %v413_v6  ;;  %s854_s26 = scalar_lea.hbm %s853_s30, 8  ;;  %p859_p4 = scmp.lt.s32.totalorder %s853_s30, %s1159_s8 }
  0x23   : > { %495 = vperm.xlu2 %826, %v491_v9   ;;  %p855_p0 = scmp.ne.s32.totalorder %s853_s30, %s854_s26  ;;  %p860_p5 = scmp.lt.s32.totalorder %s858_s13, %s854_s26 }
  0x25   : > { %733 = vmatmul.msk.bf16.vlgmr.msra.gmra.mxu1 %vm388_vm1, %v731_v7  ;;  %p856_p1 = pnand %p855_p0, %p1035_p3  ;;  %p861_p6 = por %p860_p5, %p859_p4 }
  0x27   : > { %370 = vperm.xlu1 %825, %v362_v3   ;;  %379 = vperm.xlu0 %824, %v362_v3   ;;  %p857_p2 = pneg %p856_p1 }
  0x29   : > { %p862_p7 = pnand %p861_p6, %p857_p2 }
  0x2b   : > { %585 = vperm.xlu2 %826, %v582_v11  }
  0x2f   : > { %500 = vperm.xlu1 %825, %v492_v4   ;;  %827 = vset.pattern.permute.xlu0 %v935_v1  ;;  %v747_v1 = vld [vmem:[%s1155_s4] sm:$0xff] }
  0x75   : > { %v454_v31 = vpop.permute.xlu2 %453 }
  0x7d   : > { %v496_v3 = vpop.permute.xlu2 %495 }
  0x91   : > { %v367_v12 = vpop.permute.xlu1 %366  ;;  %v377_v13 = vpop.permute.xlu0 %376 }
  0x99   : > { %v371_v15 = vpop.permute.xlu1 %370  ;;  %v380_v16 = vpop.permute.xlu0 %379 }
  0x9a   : > { %v373_v17 = vsel %vm365_vm2, %v371_v15, %v367_v12  ;;  %v382_v18 = vsel %vm375_vm3, %v380_v16, %v377_v13 }
  0x9b   : > { %v374_v19 = vpack.c.bf16 %v373_v17, %v373_v17  ;;  %v383_v20 = vpack.c.bf16 %v382_v18, %v382_v18 }
  0x9d   : > { %v394_v21 = vsel %vm392_vm0, %v374_v19, 0  ;;  %v434_v22 = vsel %vm392_vm0, %v383_v20, 0 }
  0x9e   : > { %403 = vmatpush.bf16.msra.mxu0 %v394_v21  ;;  %443 = vmatpush.bf16.msra.mxu2 %v434_v22 }
  0xa1   : > { %732 = vmatmul.msk.bf16.vlgmr.msra.gmra.mxu0 %vm388_vm1, %v387_v23  ;;  %735 = vmatmul.msk.bf16.vlgmr.msra.gmra.mxu2 %vm388_vm1, %v734_v24  ;;  %v501_v9 = vpop.permute.xlu1 %500 }
  0xa2   : > { %v424_v25 = vpop.f32.mrf.mxu1 }
  0xaa   : > { %v426_v26 = vpop.f32.mrf.mxu1 }
 0x11e   : > { %v405_v27 = vpop.f32.mrf.mxu0 }
 0x11f   : > { %v425_v28 = vadd.f32 %v424_v25, %v405_v27 }
 0x124   : > { %v445_v29 = vpop.f32.mrf.mxu2 }
 0x125   : > { %v449_v30 = vadd.f32 %v445_v29, %v425_v28 }
 0x126   : > { %v407_v32 = vpop.f32.mrf.mxu0 }
 0x127   : > { %v456_v33 = vadd.f32 %v454_v31, %v449_v30 }
 0x129   : > { %v457_v34 = vrot.slane %v456_v33, 4  ;;  %v464_v35 = vmul.f32 %v456_v33, %v456_v33 }
 0x12b   : > { %v458_v36 = vadd.f32 %v457_v34, %v456_v33  ;;  %v465_v37 = vrot.slane %v464_v35, 4 }
 0x12c   : > { %v447_v38 = vpop.f32.mrf.mxu2 }
 0x12d   : > { %v466_v39 = vadd.f32 %v465_v37, %v464_v35  ;;  %v459_v40 = vrot.slane %v458_v36, 2 }
 0x12f   : > { %v467_v41 = vrot.slane %v466_v39, 2  ;;  %v460_v42 = vadd.f32 %v459_v40, %v458_v36 }
 0x131   : > { %v468_v43 = vadd.f32 %v467_v41, %v466_v39  ;;  %v461_v44 = vrot.slane %v460_v42, 1 }
 0x133   : > { %v462_v45 = vadd.f32 %v461_v44, %v460_v42  ;;  %v469_v46 = vrot.slane %v468_v43, 1 }
 0x135   : > { %v463_v47 = vmul.f32 0.25, %v462_v45  ;;  %v470_v48 = vadd.f32 %v469_v46, %v468_v43 }
 0x137   : > { %v471_v49 = vmul.f32 0.25, %v470_v48  ;;  %v472_v50 = vmul.f32 %v463_v47, %v463_v47  ;;  %v475_v60 = vsub.f32 %v456_v33, %v463_v47  ;;  %v938_v47 = vmov -1.0  }
 0x139   : > { %v473_v51 = vsub.f32 %v471_v49, %v472_v50 }
 0x13b   : > { %v474_v52 = vmax.f32 %v473_v51, 0.0 }
 0x13d   : > { %v476_v53 = vadd.f32 1e-05, %v474_v52 }
 0x13f   : > { %828 = vrsqrt.f32 %v476_v53  ;;  %vm483_vm5 = vweird.f32 %v476_v53 }
 0x145   : > { %v829_v54 = vpop.eup %828 }
 0x146   : > { %v478_v55 = vmul.f32 %v829_v54, %v476_v53  ;;  %vm484_vm4 = vweird.f32 %v829_v54 }
 0x147   : > { %vm485_vm6 = vmor %vm483_vm5, %vm484_vm4 }
 0x148   : > { %v479_v56 = vmul.f32 %v829_v54, %v478_v55 }
 0x14a   : > { %v480_v57 = vmul.f32 0.5, %v479_v56 }
 0x14c   : > { %v481_v58 = vsub.f32 1.5, %v480_v57 }
 0x14e   : > { %v482_v59 = vmul.f32 %v829_v54, %v481_v58 }
 0x150   : > { %v486_v61 = vsel %vm485_vm6, %v829_v54, %v482_v59 }
 0x151   : > { %v487_v62 = vmul.f32 %v486_v61, %v475_v60  ;;  %v580_v61 = vld [vmem:[%s1157_s6] sm:$0xf] }
 0x153   : > { %v490_v63 = vpack.c.bf16 %v487_v62, %v487_v62  ;;  %v586_v62 = vpop.permute.xlu2 %585 }
 0x155   : > { %v512_v0 = vsel %vm392_vm0, %v490_v63, 0 }
 0x156   : > { %521 = vmatpush.bf16.msra.mxu3 %v512_v0 }
 0x159   : > { %740 = vmatmul.msk.bf16.vlgmr.msra.gmra.mxu3 %vm388_vm1, %v747_v1 }
 0x1dc   : > { %v523_v4 = vpop.f32.mrf.mxu3 }
 0x1dd   : > { %v524_v5 = vadd.f32 %v523_v4, %v496_v3 }
 0x1df   : > { %v530_v6 = vmul.f32 0.70710677, %v524_v5  ;;  %v528_v55 = vmul.f32 0.5, %v524_v5 }
 0x1e1   : > { %v536_v7 = vand.u32 2147483647, %v530_v6  ;;  %vm532_vm7 = vcmp.ge.f32.partialorder %v530_v6, 0.0 }
 0x1e2   : > { %v534_v48 = vsel %vm532_vm7, 1.0, %v938_v47 }
 0x1e3   : > { %v538_v8 = vmul.f32 0.3275911, %v536_v7  ;;  %v562_v17 = vsub.f32 0.0, %v536_v7 }
 0x1e4   : > { %v525_v10 = vpop.f32.mrf.mxu3 }
 0x1e5   : > { %v540_v11 = vadd.f32 1.0, %v538_v8  ;;  %v526_v12 = vadd.f32 %v525_v10, %v501_v9  ;;  %v564_v21 = vmul.f32 %v562_v17, %v536_v7 }
 0x1e7   : > { %830 = vrcp.f32 %v540_v11  ;;  %v531_v13 = vmul.f32 0.70710677, %v526_v12  ;;  %v566_v25 = vmul.f32 1.442695, %v564_v21  ;;  %v529_v56 = vmul.f32 0.5, %v526_v12 }
 0x1e9   : > { %v537_v14 = vand.u32 2147483647, %v531_v13  ;;  %vm533_vm8 = vcmp.ge.f32.partialorder %v531_v13, 0.0 }
 0x1ea   : > { %v535_v52 = vsel %vm533_vm8, 1.0, %v938_v47 }
 0x1eb   : > { %v539_v15 = vmul.f32 0.3275911, %v537_v14  ;;  %v563_v26 = vsub.f32 0.0, %v537_v14 }
 0x1ed   : > { %v831_v16 = vpop.eup %830  ;;  %v541_v18 = vadd.f32 1.0, %v539_v15  ;;  %v565_v31 = vmul.f32 %v563_v26, %v537_v14 }
 0x1ee   : > { %v544_v19 = vmul.f32 1.0614054, %v831_v16 }
 0x1ef   : > { %832 = vrcp.f32 %v541_v18  ;;  %v568_v36 = vmul.f32 1.442695, %v565_v31 }
 0x1f0   : > { %v546_v20 = vadd.f32 -1.4531521, %v544_v19  ;;  %834 = vpow2.f32 %v566_v25 }
 0x1f1   : > { %836 = vpow2.f32 %v568_v36 }
 0x1f2   : > { %v548_v22 = vmul.f32 %v831_v16, %v546_v20 }
 0x1f4   : > { %v550_v23 = vadd.f32 1.4214138, %v548_v22 }
 0x1f5   : > { %v833_v24 = vpop.eup %832 }
 0x1f6   : > { %v545_v27 = vmul.f32 1.0614054, %v833_v24  ;;  %v552_v28 = vmul.f32 %v831_v16, %v550_v23  ;;  %v835_v39 = vpop.eup %834 }
 0x1f7   : > { %v837_v46 = vpop.eup %836 }
 0x1f8   : > { %v547_v29 = vadd.f32 -1.4531521, %v545_v27  ;;  %v554_v30 = vadd.f32 -0.28449672, %v552_v28 }
 0x1fa   : > { %v549_v32 = vmul.f32 %v833_v24, %v547_v29  ;;  %v556_v33 = vmul.f32 %v831_v16, %v554_v30 }
 0x1fc   : > { %v551_v34 = vadd.f32 1.4214138, %v549_v32  ;;  %v558_v35 = vadd.f32 0.2548296, %v556_v33 }
 0x1fe   : > { %v553_v37 = vmul.f32 %v833_v24, %v551_v34  ;;  %v560_v38 = vmul.f32 %v831_v16, %v558_v35 }
 0x200   : > { %v555_v40 = vadd.f32 -0.28449672, %v553_v37  ;;  %v570_v41 = vmul.f32 %v835_v39, %v560_v38 }
 0x202   : > { %v557_v42 = vmul.f32 %v833_v24, %v555_v40  ;;  %v572_v44 = vsub.f32 1.0, %v570_v41 }
 0x204   : > { %v559_v43 = vadd.f32 0.2548296, %v557_v42  ;;  %v574_v50 = vmul.f32 %v572_v44, %v534_v48 }
 0x206   : > { %v561_v45 = vmul.f32 %v833_v24, %v559_v43  ;;  %v576_v54 = vadd.f32 1.0, %v574_v50 }
 0x208   : > { %v571_v49 = vmul.f32 %v837_v46, %v561_v45  ;;  %v578_v58 = vmul.f32 %v576_v54, %v528_v55 }
 0x20a   : > { %v573_v51 = vsub.f32 1.0, %v571_v49 }
 0x20c   : > { %v575_v53 = vmul.f32 %v573_v51, %v535_v52 }
 0x20e   : > { %v577_v57 = vadd.f32 1.0, %v575_v53 }
 0x210   : > { %v579_v59 = vmul.f32 %v577_v57, %v529_v56 }
 0x212   : > { %v581_v60 = vpack.c.bf16 %v579_v59, %v578_v58 }
 0x214   : > { %599 = vmatpush.bf16.msrb.mxu0 %v581_v60 }
 0x217   : > { %741 = vmatmul.msk.bf16.vlgmr.msrb.gmra.mxu0 %vm588_vm9, %v580_v61 }
 0x294   : > { %v601_v63 = vpop.f32.mrf.mxu0 }
 0x295   : > { %v602_v0 = vadd.f32 %v601_v63, %v586_v62 }
 0x297   : > { %v605_v1 = vadd.f32 %v602_v0, %v1062_v2 }
 0x299   : > { %606 = vst [vmem:[%s343_s24] sm:$0xff] %v605_v1 }
 0x29a   : > { %865 = shalt.err (!%p862_p7)
}
 0x29b   : > { %748 = dma.vmem_to_hbm [thread:$0]  (%p1035_p3), %s623_s25, 128, %s625_s16, %s608_s9  }
 0x29c   : > { %v603_v2 = vpop.f32.mrf.mxu0 }
 0x29d PF: > { %p754_p9 = scmp.ge.s32.totalorder %s932_s12, 2  ;;  %s636_s15 = sand.u32 1, %s904_s27  }
 0x29e   : > { %s637_s20 = scalar_lea.sflag [#allocation3], %s636_s15 }
 0x29f   : > { %p751_p10 = pnand %p754_p9, %p1044_p8 }
 0x2a1   : > { %p752_p11 = pneg %p751_p10 }
 0x2a3   : > { %899 = dma.done.wait (%p752_p11), %s637_s20, 128  }
 0x2a4   : > { %901 = vsyncadd (%p752_p11), %s637_s20, 4294967168  ;;  %s21_s12 = sadd.s32 1, %s932_s12   ;;  %s1170_s30 = sld [smem:[#allocation5_spill]] }
 0x2a5   : > { %p18_p12 = scmp.ge.s32.totalorder %s21_s12, 6   ;;  %s1171_s9 = sld [smem:[#allocation6_spill]] }
 0x2a6   : > { %s1172_s10 = sld [smem:[#allocation7_spill]]  ;;  %s1174_s27 = smov %s908_s28 }
 0x2a7   : > { %s1173_s11 = sld [smem:[#allocation8_spill]]  ;;  %s1175_s28 = smov %s912_s29 }
 0x2a8   : > { %s1176_s29 = smov %s1053_s23  ;;  %20 = sbr.rel (!%p18_p12) target bundleno = 5 (0x5), region = 92 }
 0x2ad   :  { %643 = vsyncpa [#allocation3], 1 }
 0x2ae   :  { %645 = vsyncpa [#allocation3 + $0x1], 1 }

</bundles_post_ra>
